<compile_context>
chip_gen: v7x
topology: tpu7x:2x2x1
jax: 0.10.0
libtpu: 0.0.40
codegen_flags: <defaults>
</compile_context>

<pallas_src>
import functools

import jax
import jax.numpy as jnp
from jax.experimental import pallas as pl
from jax.experimental.pallas import tpu as pltpu


def _round_up(x, m):
    return ((x + m - 1) // m) * m


def _cdiv(a, b):
    return -(-a // b)


def _cls_layer_text_kernel(x_ref, w_ref, b_ref, o_ref, xn_ref, *, eps, inv_nm1):
    # x_ref:  (TM, D)   rows of lang_feat
    # w_ref:  (D, TN)   gamma-folded W^T tile (compute dtype)
    # b_ref:  (1, TN)   beta-folded bias tile (f32)
    # o_ref:  (TM, TN)  output tile
    # xn_ref: (TM, D)   VMEM scratch: normalized rows, cast to compute dtype
    j = pl.program_id(1)

    # LayerNorm once per row tile; reused for every output-column tile.
    @pl.when(j == 0)
    def _():
        x = x_ref[...].astype(jnp.float32)
        mean = jnp.mean(x, axis=-1, keepdims=True)
        centered = x - mean
        # torch.Tensor.std() default is unbiased (divide by N-1).
        var = jnp.sum(centered * centered, axis=-1, keepdims=True) * inv_nm1
        std = jnp.sqrt(var)
        # One exact reciprocal per row (EUP slot) instead of a (TM, D) divide.
        inv = pl.reciprocal(std + eps, approx=False)          # (TM, 1)
        xn_ref[...] = (centered * inv).astype(xn_ref.dtype)   # (TM, D)

    # MXU matmul in the weight dtype (bf16 by default), f32 accumulation.
    y = jnp.dot(xn_ref[...], w_ref[...], preferred_element_type=jnp.float32)
    o_ref[...] = (y + b_ref[...]).astype(o_ref.dtype)


def prepare_params(params, *, compute_dtype=jnp.bfloat16):
    """One-time weight prep (hoisted out of the per-call path):
    fold gamma into W^T and beta into the bias (both in f32), transpose W to
    (D, O_pad), pad O to a lane-dense multiple of 128, cast W to the MXU compute
    dtype.  For compute_dtype=f32 the fold stays exact."""
    gamma = params["gamma"].astype(jnp.float32)      # (D,)
    beta = params["beta"].astype(jnp.float32)        # (D,)
    w = params["w"].astype(jnp.float32)              # (O, D)
    b = params["b"].astype(jnp.float32)              # (O,)
    O, D = w.shape
    o_pad = _round_up(O, 128)

    w_folded = (w * gamma[None, :]).T                # (D, O) = diag(gamma) @ W^T
    b_folded = beta @ w.T + b                        # (O,)   = b_2 @ W^T + b

    w_t = jnp.zeros((D, o_pad), compute_dtype).at[:, :O].set(
        w_folded.astype(compute_dtype))
    bias = jnp.zeros((1, o_pad), jnp.float32).at[0, :O].set(b_folded)

    return {"w_t": w_t, "bias": bias}


def cls_layer_text_forward(lang_feat, img_feat, audio_feat, prepared, *,
                           out_dim, eps=1e-6, row_tile=512):
    """Pallas implementation of cls_layer_text.forward.

    lang_feat: (B, S, D). img_feat / audio_feat are unused (as in the module).
    prepared:  output of prepare_params(params).
    """
    del img_feat, audio_feat  # unused by the reference forward pass

    B, S, D = lang_feat.shape
    rows = B * S

    w_t = prepared["w_t"]        # (D, o_pad), compute dtype
    bias = prepared["bias"]      # (1, o_pad), f32
    o_pad = w_t.shape[1]
    compute_dtype = w_t.dtype
    w_bytes = jnp.dtype(compute_dtype).itemsize

    # VMEM budget from the actual chip (v5e/v6e 128 MiB, v7x 64 MiB).
    try:
        vmem_cap = pltpu.get_tpu_info().vmem_capacity_bytes
    except Exception:  # conservative fallback
        vmem_cap = 64 * 1024 * 1024
    vmem_limit = min(int(0.75 * vmem_cap), 96 * 1024 * 1024)

    # --- Row tiling: balanced tiles; >= 2 tiles when possible (v7x megacore). ---
    n_row_tiles = max(1, _cdiv(rows, row_tile))
    if n_row_tiles == 1 and rows >= 16:
        n_row_tiles = 2
    tm = _round_up(_cdiv(rows, n_row_tiles), 8)
    rows_pad = tm * n_row_tiles

    # --- Output tiling: keep the whole W^T resident whenever it is modest. ---
    w_total_bytes = D * o_pad * w_bytes
    resident_w = w_total_bytes <= min(16 * 1024 * 1024, vmem_limit // 4)
    if resident_w:
        tn = o_pad                                 # j axis collapses to 1
    else:
        tn = 512 if o_pad % 512 == 0 else (256 if o_pad % 256 == 0 else 128)
    n_col_tiles = o_pad // tn

    x2d = lang_feat.reshape(rows, D)
    if rows_pad != rows:
        x2d = jnp.pad(x2d, ((0, rows_pad - rows), (0, 0)))

    grid = (n_row_tiles, n_col_tiles)   # j innermost -> xn scratch reused over j

    if resident_w:
        w_spec = pl.BlockSpec((D, tn), lambda i, j: (0, 0))   # resident block
    else:
        # Streaming fallback for very large O: deepen the W pipeline so the
        # short per-step matmul does not expose the W-tile DMA.
        try:
            w_spec = pl.BlockSpec((D, tn), lambda i, j: (0, j),
                                  pipeline_mode=pl.Buffered(3))
        except TypeError:
            w_spec = pl.BlockSpec((D, tn), lambda i, j: (0, j))

    cost = pl.CostEstimate(
        flops=2 * rows_pad * D * o_pad + 6 * rows_pad * D,
        transcendentals=2 * rows_pad,
        bytes_accessed=(rows_pad * D * 4
                        + D * o_pad * w_bytes * (1 if resident_w else n_row_tiles)
                        + o_pad * 4
                        + rows_pad * o_pad * 4),
    )

    inv_nm1 = 1.0 / float(max(D - 1, 1))

    out2d = pl.pallas_call(
        functools.partial(_cls_layer_text_kernel, eps=eps, inv_nm1=inv_nm1),
        out_shape=jax.ShapeDtypeStruct((rows_pad, o_pad), lang_feat.dtype),
        grid_spec=pltpu.PrefetchScalarGridSpec(
            num_scalar_prefetch=0,
            grid=grid,
            in_specs=[
                pl.BlockSpec((tm, D), lambda i, j: (i, 0)),   # x rows (reused over j)
                w_spec,                                       # gamma-folded W^T
                pl.BlockSpec((1, tn), lambda i, j: (0, j)),   # beta-folded bias
            ],
            out_specs=pl.BlockSpec((tm, tn), lambda i, j: (i, j)),
            scratch_shapes=[pltpu.VMEM((tm, D), compute_dtype)],  # cached xn
        ),
        compiler_params=pltpu.CompilerParams(
            # j carries the xn scratch across column tiles -> "arbitrary";
            # the row axis is sharded across TensorCores on v7x.
            dimension_semantics=("parallel", "arbitrary"),
            vmem_limit_bytes=vmem_limit,
        ),
        cost_estimate=cost,
    )(x2d, w_t, bias)

    return out2d[:rows, :out_dim].reshape(B, S, out_dim)


def init_params(key, input_dim, output_dim):
    """Deterministic synthetic parameters matching the module's __init__ shapes.
    gamma/beta are perturbed away from 1/0 so the fold is actually exercised."""
    k_g, k_bt, k_w, k_b = jax.random.split(key, 4)
    return {
        "gamma": 1.0 + 0.1 * jax.random.normal(k_g, (input_dim,), jnp.float32),
        "beta": 0.05 * jax.random.normal(k_bt, (input_dim,), jnp.float32),
        "w": jax.random.normal(k_w, (output_dim, input_dim), jnp.float32) * 0.02,
        "b": jax.random.normal(k_b, (output_dim,), jnp.float32) * 0.02,
    }


def _reference(lang_feat, params, eps=1e-6):
    x = lang_feat.astype(jnp.float32)
    mean = jnp.mean(x, axis=-1, keepdims=True)
    var = jnp.sum((x - mean) ** 2, axis=-1, keepdims=True) / (x.shape[-1] - 1)
    xn = params["gamma"] * (x - mean) / (jnp.sqrt(var) + eps) + params["beta"]
    return xn @ params["w"].T + params["b"]


if __name__ == "__main__":
    key = jax.random.PRNGKey(0)
    k_lang, k_img, k_aud, k_param = jax.random.split(key, 4)

    B, S, D, O = 2, 8, 32, 16
    lang_feat = jax.random.normal(k_lang, (B, S, D), jnp.float32)
    img_feat = jax.random.normal(k_img, (B, S, D), jnp.float32)    # unused by forward
    audio_feat = jax.random.normal(k_aud, (B, S, D), jnp.float32)  # unused by forward

    params = init_params(k_param, D, O)
    ref = _reference(lang_feat, params)

    fwd = jax.jit(functools.partial(cls_layer_text_forward, out_dim=O))

    # Fast path: bf16 MXU operands, f32 accumulation, f32 LayerNorm.
    prepared_bf16 = prepare_params(params, compute_dtype=jnp.bfloat16)
    out = jax.block_until_ready(fwd(lang_feat, img_feat, audio_feat, prepared_bf16))
    assert out.shape == (B, S, O)
    assert jnp.allclose(out, ref, atol=1e-2, rtol=1e-2), float(jnp.max(jnp.abs(out - ref)))

    # Exact path: f32 weights (fold done in f32) -> tight tolerance.
    prepared_f32 = prepare_params(params, compute_dtype=jnp.float32)
    out_f32 = jax.block_until_ready(fwd(lang_feat, img_feat, audio_feat, prepared_f32))
    assert out_f32.shape == (B, S, O)
    assert jnp.allclose(out_f32, ref, atol=1e-5, rtol=1e-5), float(jnp.max(jnp.abs(out_f32 - ref)))

    print("KERNEL_OK")
</pallas_src>

<mosaic_0001>
module attributes {stable_mosaic.version = 11 : i64} {
  func.func @_cls_layer_text_kernel(%arg0: i32, %arg1: i32, %arg2: memref<8x32xf32, #tpu.memory_space<vmem>>, %arg3: memref<32x128xbf16, #tpu.memory_space<vmem>>, %arg4: memref<1x128xf32, #tpu.memory_space<vmem>>, %arg5: memref<8x128xf32, #tpu.memory_space<vmem>>, %arg6: memref<8x32xbf16, #tpu.memory_space<vmem>>) attributes {dimension_semantics = [#tpu.dimension_semantics<parallel>, #tpu.dimension_semantics<arbitrary>], iteration_bounds = array<i64: 2, 1>, scalar_prefetch = 0 : i64, scratch_operands = 1 : i64, tpu.core_type = #tpu.core_type<tc>, window_params = [{transform_indices = @transform_0, window_bounds = array<i64: 8, 32>}, {pipeline_mode = #tpu.pipeline_mode<synchronous>, transform_indices = @transform_1, window_bounds = array<i64: 32, 128>}, {transform_indices = @transform_2, window_bounds = array<i64: 1, 128>}, {transform_indices = @transform_3, window_bounds = array<i64: 8, 128>}]} {
    %c0_i32 = arith.constant 0 : i32
    %0 = arith.cmpi eq, %arg1, %c0_i32 : i32
    %1 = arith.extui %0 : i1 to i32
    %c0_i32_0 = arith.constant 0 : i32
    %2 = arith.cmpi ne, %1, %c0_i32_0 : i32
    scf.if %2 {
      %c0_8 = arith.constant 0 : index
      %c0_9 = arith.constant 0 : index
      %10 = vector.load %arg2[%c0_8, %c0_9] : memref<8x32xf32, #tpu.memory_space<vmem>>, vector<8x32xf32>
      %cst_10 = arith.constant dense<0.000000e+00> : vector<8xf32>
      %11 = vector.multi_reduction <add>, %10, %cst_10 [1] : vector<8x32xf32> to vector<8xf32>
      %12 = vector.shape_cast %11 : vector<8xf32> to vector<8x1xf32>
      %cst_11 = arith.constant 3.200000e+01 : f32
      %13 = vector.broadcast %cst_11 : f32 to vector<8x1xf32>
      %14 = arith.divf %12, %13 : vector<8x1xf32>
      %15 = vector.broadcast %14 : vector<8x1xf32> to vector<8x32xf32>
      %16 = arith.subf %10, %15 : vector<8x32xf32>
      %17 = arith.mulf %16, %16 : vector<8x32xf32>
      %cst_12 = arith.constant dense<0.000000e+00> : vector<8xf32>
      %18 = vector.multi_reduction <add>, %17, %cst_12 [1] : vector<8x32xf32> to vector<8xf32>
      %19 = vector.shape_cast %18 : vector<8xf32> to vector<8x1xf32>
      %cst_13 = arith.constant 0.0322580636 : f32
      %20 = vector.broadcast %cst_13 : f32 to vector<8x1xf32>
      %21 = arith.mulf %19, %20 : vector<8x1xf32>
      %22 = math.sqrt %21 : vector<8x1xf32>
      %cst_14 = arith.constant 9.99999997E-7 : f32
      %23 = vector.broadcast %cst_14 : f32 to vector<8x1xf32>
      %24 = arith.addf %22, %23 : vector<8x1xf32>
      %25 = tpu.reciprocal %24 : vector<8x1xf32> -> vector<8x1xf32>
      %26 = vector.broadcast %25 : vector<8x1xf32> to vector<8x32xf32>
      %27 = arith.mulf %16, %26 : vector<8x32xf32>
      %28 = arith.truncf %27 : vector<8x32xf32> to vector<8x32xbf16>
      %c0_15 = arith.constant 0 : index
      %c0_16 = arith.constant 0 : index
      %29 = vector.load %arg6[%c0_15, %c0_16] : memref<8x32xbf16, #tpu.memory_space<vmem>>, vector<8x32xbf16>
      tpu.vector_store %arg6[%c0_15, %c0_16], %28 {strides = array<i32>} : memref<8x32xbf16, #tpu.memory_space<vmem>>, vector<8x32xbf16>,
    } else {
    }
    %c0 = arith.constant 0 : index
    %c0_1 = arith.constant 0 : index
    %3 = vector.load %arg6[%c0, %c0_1] : memref<8x32xbf16, #tpu.memory_space<vmem>>, vector<8x32xbf16>
    %c0_2 = arith.constant 0 : index
    %c0_3 = arith.constant 0 : index
    %4 = vector.load %arg3[%c0_2, %c0_3] : memref<32x128xbf16, #tpu.memory_space<vmem>>, vector<32x128xbf16>
    %cst = arith.constant dense<0.000000e+00> : vector<8x128xf32>
    %5 = tpu.matmul %3, %4, %cst {dimension_numbers = #tpu.dot_dimension_numbers<[1], [0], [0], [1], [0, 0, 1, 1], [], []>} : vector<8x32xbf16>, vector<32x128xbf16>, vector<8x128xf32> -> vector<8x128xf32>
    %c0_4 = arith.constant 0 : index
    %c0_5 = arith.constant 0 : index
    %6 = vector.load %arg4[%c0_4, %c0_5] : memref<1x128xf32, #tpu.memory_space<vmem>>, vector<1x128xf32>
    %7 = vector.broadcast %6 : vector<1x128xf32> to vector<8x128xf32>
    %8 = arith.addf %5, %7 : vector<8x128xf32>
    %c0_6 = arith.constant 0 : index
    %c0_7 = arith.constant 0 : index
    %9 = vector.load %arg5[%c0_6, %c0_7] : memref<8x128xf32, #tpu.memory_space<vmem>>, vector<8x128xf32>
    tpu.vector_store %arg5[%c0_6, %c0_7], %8 {strides = array<i32>} : memref<8x128xf32, #tpu.memory_space<vmem>>, vector<8x128xf32>,
    return
  }
  func.func @transform_0(%arg0: i32, %arg1: i32) -> (i32, i32) {
    %c0_i32 = arith.constant 0 : i32
    %c0_i32_0 = arith.constant 0 : i32
    return %arg0, %c0_i32 : i32, i32
  }
  func.func @transform_1(%arg0: i32, %arg1: i32) -> (i32, i32) {
    %c0_i32 = arith.constant 0 : i32
    %c0_i32_0 = arith.constant 0 : i32
    %c0_i32_1 = arith.constant 0 : i32
    return %c0_i32, %c0_i32_0 : i32, i32
  }
  func.func @transform_2(%arg0: i32, %arg1: i32) -> (i32, i32) {
    %c0_i32 = arith.constant 0 : i32
    %c0_i32_0 = arith.constant 0 : i32
    return %c0_i32, %arg1 : i32, i32
  }
  func.func @transform_3(%arg0: i32, %arg1: i32) -> (i32, i32) {
    %c0_i32 = arith.constant 0 : i32
    return %arg0, %arg1 : i32, i32
  }
}

</mosaic_0001>

<bundles_post_ra>
// kernel: cls_layer_text_forward.1
= control target key start
LH: loop header
LB: loop body
LE: loop exit
PB: predicated region body
PF: predicated region fallthrough
CT: control target
= control target key end

     0   :  { %8 = vsyncpa [#allocation4], 0  ;;  %s846_s0 = inlined_call_operand.hbm [shape: f32[16,32], index: 0, kind: input, shape index: {}]   ;;  %s847_s1 = inlined_call_operand.hbm [shape: bf16[32,128], index: 1, kind: input, shape index: {}]   ;;  %s848_s2 = inlined_call_operand.vmem [shape: f32[1,128], index: 2, kind: input, shape index: {}]   ;;  %s849_s3 = inlined_call_operand.vmem [shape: f32[16,128], index: 3, kind: output, shape index: {}]  }
   0x1   :  { %10 = vsyncpa [#allocation4 + $0x1], 0 }
   0x2   :  { %11 = vsyncpa [#allocation6], 0  ;;  %s685_s12 = smov 0   ;;  %s687_s13 = smov 0  }
   0x3   :  { %s689_s14 = smov 0   ;;  %s691_s15 = smov 0  }
   0x4   :  { %s693_s16 = smov 0   ;;  %s695_s17 = smov 0  }
   0x5 LB: > { %s440_s18 = sadd.s32 4294967295, %s657_s17   ;;  %p49_p0 = scmp.ne.s32.totalorder %s641_s13, %s637_s12  ;;  %s657_s17 = sphi %s695_s17, %s17_s17   ;;  %s653_s16 = sphi %s693_s16, %s866_s16   ;;  %s649_s15 = sphi %s691_s15, %s865_s15   ;;  %s645_s14 = sphi %s689_s14, %s864_s14   ;;  %s641_s13 = sphi %s687_s13, %s863_s13   ;;  %s637_s12 = sphi %s685_s12, %s862_s12  }
   0x6   : > { %p715_p1 = scmp.eq.s32.totalorder %s440_s18, 0  ;;  %p442_p2 = scmp.ge.s32.totalorder %s657_s17, 1 }
   0x7   : > { %p135_p3 = scmp.lt.s32.totalorder %s657_s17, 3  ;;  %s659_s22 = smov [#allocation5]  }
   0x8   : > { %s854_s19 = scalar_select %p715_p1, 1, 0 }
   0x9   : > { %p723_p4 = por %p715_p1, %p49_p0  ;;  %p727_p5 = pnand %p442_p2, %p135_p3 }
   0xa   : > { %s147_s23 = sshll.u32 %s659_s22, 4  ;;  %s29_s25 = sadd.s32 1, %s653_s16  ;;  %s148_s23 = int_to_ptr.vmem [resolvable:$true] %s147_s23 }
   0xb   : > { %s855_s20 = scalar_select %p723_p4, 1, 0 }
   0xc   : > { %s856_s21 = scalar_select %p727_p5, 1, 0 }
   0xd   : > { %p475_p6 = pneg %p727_p5  ;;  %s545_s28 = scalar_lea.hbm %s847_s1, 256 }
   0xe   : > { %p546_p8 = scmp.ne.s32.totalorder %s847_s1, %s545_s28  ;;  %p552_p12 = scmp.lt.u32.totalorder %s545_s28, %s847_s1 }
   0xf   : > { %p735_p7 = pnand %p475_p6, %p715_p1 }
  0x11   : > { %p547_p9 = pneg %p735_p7 }
  0x13   : > { %p548_p10 = pnand %p547_p9, %p546_p8 }
  0x15   : > { %p549_p11 = pneg %p548_p10 }
  0x17   : > { %p554_p13 = pnand %p552_p12, %p549_p11 }
  0x19   : > { %557 = shalt.err (!%p554_p13)
}
  0x1a   : > { %s558_s6 = scalar_lea.vmem %s148_s23, 256  ;;  %p566_p6 = scmp.lt.s32.totalorder %s148_s23, %s148_s23 }
  0x1b   : > { %p559_p0 = scmp.ne.s32.totalorder %s148_s23, %s558_s6  ;;  %p567_p1 = scmp.lt.s32.totalorder %s558_s6, %s558_s6 }
  0x1d   : > { %p561_p2 = pnand %p559_p0, %p547_p9  ;;  %p568_p4 = por %p567_p1, %p566_p6 }
  0x1f   : > { %p562_p3 = pneg %p561_p2 }
  0x21   : > { %p569_p5 = pnand %p568_p4, %p562_p3 }
  0x23   : > { %572 = shalt.err (!%p569_p5)
}
  0x24   : > { %s660_s7 = smov 64   ;;  %s661_s8 = smov 4  }
  0x25   : > { %478 = dma.hbm_to_vmem [thread:$0]  (!%p735_p7), %s847_s1, 256, %s148_s23, [#allocation6], %s660_s7, %s660_s7, %s661_s8  }
  0x26   : > { %p31_p1 = scmp.ge.s32.totalorder %s29_s25, 2  ;;  %s36_s11 = sadd.s32 1, %s645_s14 }
  0x27   : > { %p43_p4 = scmp.ne.s32.totalorder %s645_s14, %s641_s13  ;;  %p44_p5 = scmp.eq.s32.totalorder %s657_s17, 0 }
  0x28   : > { %s868_s25 = smov (%p31_p1, %s29_s25), 0  ;;  %p484_p9 = scmp.lt.s32.totalorder %s657_s17, 2 }
  0x29   : > { %p45_p8 = por %p44_p5, %p43_p4  ;;  %s33_s12 = ssub.s32 %s653_s16, %s868_s25 }
  0x2a   : > { %s167_s18 = sand.u32 1, %s645_s14   ;;  %p34_p10 = scmp.eq.s32.totalorder %s33_s12, 0 }
  0x2b   : > { %s446_s22 = sshll.u32 %s167_s18, 3  ;;  %s447_s26 = sshll.u32 %s653_s16, 7 }
  0x2c   : > { %s768_s27 = scalar_select %p34_p10, %s645_s14, %s36_s11  }
  0x2d   : > { %s773_s23 = scalar_lea.hbm %s846_s0, %s447_s26  ;;  %s171_s29 = scalar_lea.vmem [#allocation3], %s446_s22 }
  0x2e   : > { %s178_s30 = sshll.u32 %s171_s29, 4  ;;  %p775_p7 = pnand %p484_p9, %p45_p8  ;;  %s779_s30 = int_to_ptr.vmem [resolvable:$true] %s178_s30 }
  0x2f   : > { %s168_s5 = scalar_lea.sflag [#allocation4], %s167_s18  ;;  %s573_s6 = scalar_lea.hbm %s773_s23, 128 }
  0x30   : > { %p574_p11 = scmp.ne.s32.totalorder %s773_s23, %s573_s6  ;;  %p575_p12 = pneg %p775_p7 }
  0x31   : > { %s578_s9 = scalar_lea.hbm %s846_s0, 256  ;;  %p579_p2 = scmp.lt.u32.totalorder %s773_s23, %s846_s0 }
  0x32   : > { %p576_p13 = pnand %p575_p12, %p574_p11  ;;  %p580_p3 = scmp.lt.u32.totalorder %s578_s9, %s573_s6 }
  0x33   : > { %p582_p1 = scmp.lt.u32.totalorder %s573_s6, %s773_s23 }
  0x34   : > { %p577_p0 = pneg %p576_p13  ;;  %p581_p6 = por %p580_p3, %p579_p2 }
  0x36   : > { %p583_p4 = por %p582_p1, %p581_p6 }
  0x38   : > { %p584_p5 = pnand %p583_p4, %p577_p0 }
  0x3a   : > { %587 = shalt.err (!%p584_p5)
}
  0x3b   : > { %s588_s12 = scalar_lea.vmem %s779_s30, 128  ;;  %s662_s18 = smov [#allocation3]  }
  0x3c   : > { %p589_p8 = scmp.ne.s32.totalorder %s779_s30, %s588_s12  ;;  %s593_s22 = sshll.u32 %s662_s18, 4  ;;  %s594_s22 = int_to_ptr.vmem [resolvable:$false] %s593_s22 }
  0x3d   : > { %s595_s26 = scalar_lea.vmem %s594_s22, 256  ;;  %p596_p11 = scmp.lt.s32.totalorder %s779_s30, %s594_s22 }
  0x3e   : > { %p591_p9 = pnand %p589_p8, %p575_p12  ;;  %p597_p13 = scmp.lt.s32.totalorder %s595_s26, %s588_s12 }
  0x40   : > { %p592_p10 = pneg %p591_p9  ;;  %p598_p2 = por %p597_p13, %p596_p11 }
  0x42   : > { %p599_p3 = pnand %p598_p2, %p592_p10 }
  0x44   : > { %602 = shalt.err (!%p599_p3)
}
  0x45   : > { %482 = dma.hbm_to_vmem [thread:$0]  (!%p775_p7), %s773_s23, 128, %s779_s30, %s168_s5  }
  0x46   : > { %p859_p0 = scmp.ne.s32.totalorder %s856_s21, 0 }
  0x47   : > { %s189_s24 = sand.u32 (!%p859_p0), 1, %s641_s13   ;;  %p860_p12 = scmp.ne.s32.totalorder (!%p859_p0), %s855_s20, 0 }
  0x48   : > { %187 = sbr.rel (%p859_p0) target bundleno = 633 (0x279), region = 32  ;;  %s449_s28 = sshll.u32 (!%p859_p0), %s189_s24, 3 }
  0x49   : > { %s190_s29 = scalar_lea.sflag (!%p859_p0), [#allocation4], %s189_s24  ;;  %s193_s6 = scalar_lea.vmem (!%p859_p0), [#allocation3], %s449_s28 }
  0x4f   : > { %628 = dma.done.wait (%p860_p12), %s190_s29, 128  }
  0x50   : > { %630 = vsyncadd (%p860_p12), %s190_s29, 4294967168  ;;  %p861_p6 = scmp.ne.s32.totalorder %s854_s19, 0 }
  0x52   : > { %632 = dma.done.wait (%p861_p6), [#allocation6], 256  }
  0x53   : > { %634 = vsyncadd (%p861_p6), [#allocation6], 4294967040  ;;  %vm241_vm0 = vcmask 261120   ;;  %v240_v0 = vld [vmem:[%s193_s6] sm:$0xff]  ;;  %v539_v7 = vld [vmem:[#allocation5] sm:$0xff]   ;;  %v663_v8 = vmov 0.0  }
  0x54   : > { %v242_v1 = vsel %vm241_vm0, %v240_v0, 0.0  ;;  %461 = vmatprep.subr.bf16.mxu0 %v663_v8  ;;  %vm664_vm1 = vmmov 0   ;;  %v540_v9 = vld [vmem:[#allocation5 + $0x8] sm:$0xff]   ;;  %vm264_vm4 = vcmask 257024   ;;  %p228_p7 = scmp.lt.s32.totalorder %s649_s15, 1 }
  0x55   : > { %243 = vadd.xlane.f32.xlu0 %v242_v1  ;;  %465 = vmatprep.mubr.msk.bf16.mxu0 %vm664_vm1, %v663_v8  ;;  %v452_v22 = vld [vmem:[%s848_s2] ss:$0 sm:$0xff] }
  0x56   : > { %462 = vmatpush3.bf16.msra.mxu0 %v539_v7  ;;  %s870_s15 = smov (!%p228_p7, %s649_s15), 1 }
  0x57   : > { %463 = vmatprep.subr.bf16.mxu0 %v663_v8  ;;  %s451_s19 = sshll.u32 %s870_s15, 3 }
  0x58   : > { %s234_s4 = scalar_lea.vmem %s849_s3, %s451_s19 }
  0x5a   : > { %464 = vmatpush3.bf16.msra.mxu0 %v540_v9 }
  0xe2   : > { %v244_v2 = vpop.xlane.xlu0 %243 }
  0xe3   : > { %v246_v3 = vmul.f32 0.03125, %v244_v2 }
  0xe5   : > { %v247_v4 = vsub.f32 %v240_v0, %v246_v3 }
  0xe7   : > { %v248_v5 = vmul.f32 %v247_v4, %v247_v4 }
  0xe9   : > { %v249_v6 = vsel %vm241_vm0, %v248_v5, 0.0 }
  0xea   : > { %250 = vadd.xlane.f32.xlu0 %v249_v6 }
 0x177   : > { %v251_v10 = vpop.xlane.xlu0 %250 }
 0x178   : > { %v252_v11 = vmul.f32 0.032258064, %v251_v10 }
 0x17a   : > { %541 = vrsqrt.f32 %v252_v11  ;;  %vm255_vm2 = vcmp.eq.f32.partialorder %v252_v11, inf  ;;  %v258_v14 = vand.u32 2147483648, %v252_v11  ;;  %vm257_vm3 = vcmp.eq.f32.partialorder %v252_v11, 0.0 }
 0x184   : > { %v542_v12 = vpop.eup %541 }
 0x185   : > { %v254_v13 = vmul.f32 %v542_v12, %v252_v11 }
 0x187   : > { %v256_v15 = vsel %vm255_vm2, %v252_v11, %v254_v13 }
 0x188   : > { %v259_v16 = vsel %vm257_vm3, %v258_v14, %v256_v15 }
 0x189   : > { %v260_v17 = vadd.f32 1e-06, %v259_v16 }
 0x18b   : > { %543 = vrcp.f32 %v260_v17 }
 0x195   : > { %v544_v18 = vpop.eup %543 }
 0x196   : > { %v262_v19 = vmul.f32 %v544_v18, %v247_v4 }
 0x198   : > { %v263_v20 = vpack.c.bf16 %v262_v19, %v262_v19 }
 0x19a   : > { %265 = vst.msk [vmem:[#allocation2] sm:$0xf] %vm264_vm4, %v263_v20 }
 0x1a1   : > { %v266_v21 = vld [vmem:[#allocation2] sm:$0xf] }
 0x1a2   : > { %466 = vmatmul.mubr.msk.bf16.vlgmr.msra.gmra.mrb[0].mxu0 %vm241_vm0, %v266_v21 }
 0x275   : > { %v328_v23 = vpop.f32.mrb[0].mxu0 }
 0x276   : > { %v329_v24 = vadd.f32 %v452_v22, %v328_v23  ;;  %v467_v25 = vpop.f32.mrb[1].mxu0 }
 0x277   : > { %v331_v26 = vpop.f32.mrb[2].mxu0 }
 0x278   : > { %334 = vst [vmem:[%s234_s4] sm:$0xff] %v329_v24  ;;  %v468_v27 = vpop.f32.mrb[3].mxu0 }
 0x279 PF: > { %s17_s17 = sadd.s32 1, %s657_s17   ;;  %s862_s12 = smov %s641_s13 }
 0x27a   : > { %p14_p1 = scmp.ge.s32.totalorder %s17_s17, 4   ;;  %s863_s13 = smov %s645_s14 }
 0x27b   : > { %s864_s14 = smov %s768_s27  ;;  %s865_s15 = smov %s653_s16 }
 0x27c   : > { %s866_s16 = smov %s868_s25  ;;  %16 = sbr.rel (!%p14_p1) target bundleno = 5 (0x5), region = 83 }
 0x283   :  { %360 = vsyncpa [#allocation4], 1 }
 0x284   :  { %362 = vsyncpa [#allocation4 + $0x1], 1 }
 0x285   :  { %363 = vsyncpa [#allocation6], 1 }

</bundles_post_ra>
